<compile_context>
chip_gen: v7x
topology: tpu7x:2x2x1
jax: 0.10.0
libtpu: 0.0.40
codegen_flags: <defaults>
</compile_context>

<pallas_src>
import functools

import jax
import jax.numpy as jnp
from jax import lax
from jax.experimental import pallas as pl
from jax.experimental.pallas import tpu as pltpu


def _round_up(n: int, m: int) -> int:
    return ((n + m - 1) // m) * m


def mlp_kernel(xt_ref, w1_ref, w2_ref, b2_ref, w3_ref, b3_ref, o_ref, *, chunk: int):
    # xt_ref: (16, TB) bf16  -- features (+ ones row for b1, zero pad) on sublanes,
    #                           batch on lanes (lane-dense).
    # w1_ref: (64, 16) bf16  -- fc1 weight, b1 folded into column 13.
    # w2_ref: (32, 64) bf16   b2_ref: (32, 1) f32
    # w3_ref: (32, 1)  f32    b3_ref: (1, 1)  f32
    # o_ref : (1, TB)  f32   -- lane-dense output row.
    tb = xt_ref.shape[1]
    nchunks = tb // chunk

    w1 = w1_ref[...]
    w2 = w2_ref[...]
    # Hoist lane-broadcasts out of the chunk loop (JAX does not CSE broadcast_in_dim).
    b2b = jnp.broadcast_to(b2_ref[...], (b2_ref.shape[0], chunk))
    w3b = jnp.broadcast_to(w3_ref[...], (w3_ref.shape[0], chunk))
    b3b = jnp.broadcast_to(b3_ref[...], (1, chunk))

    def body(ci, carry):
        off = pl.multiple_of(ci * chunk, chunk)
        xc = xt_ref[:, pl.ds(off, chunk)]                              # (16, C) bf16
        # fc1 (+ folded bias) + ReLU; f32 accumulation on the MXU.
        h1 = jnp.dot(w1, xc, preferred_element_type=jnp.float32)       # (64, C)
        h1 = jnp.maximum(h1, 0.0).astype(jnp.bfloat16)
        # fc2 + bias + ReLU.
        h2 = jnp.dot(w2, h1, preferred_element_type=jnp.float32)       # (32, C)
        h2 = jnp.maximum(h2 + b2b, 0.0)
        # fc3: VPU multiply + sublane reduction (the N=1 layer stays off the MXU).
        out = jnp.sum(h2 * w3b, axis=0, keepdims=True) + b3b           # (1, C)
        o_ref[:, pl.ds(off, chunk)] = out.astype(o_ref.dtype)
        return carry

    lax.fori_loop(0, nchunks, body, 0)


@functools.partial(jax.jit, static_argnames=("tile_b", "chunk"))
def tab_transformer_forward(x, params, *, tile_b: int = 16384, chunk: int = 256):
    """x: (B, 13) float32 -> (B, 1) float32."""
    w1, b1, w2, b2, w3, b3 = params                 # PyTorch layouts: (64,13),(64,),...
    B, n_in = x.shape
    n_h1, n_h2 = w1.shape[0], w2.shape[0]
    n_f = max(16, _round_up(n_in + 1, 16))          # 13 features + ones row -> 16

    b_pad = _round_up(B, 128)                       # pad batch to a lane multiple only
    tb = min(_round_up(tile_b, 128), b_pad)         # batch tile (lanes)
    c = max(128, _round_up(min(chunk, tb), 128))    # in-kernel sub-chunk
    if tb % c:
        c = 128
    grid = (pl.cdiv(b_pad, tb),)                    # boundary block covers b_pad % tb

    # fc1 weight padded to 16 input columns with b1 folded in (column n_in multiplies
    # the constant-1.0 input row); padding columns are zero.
    w1p = (jnp.zeros((n_h1, n_f), jnp.float32)
           .at[:, :n_in].set(w1)
           .at[:, n_in].set(b1)).astype(jnp.bfloat16)
    w2b = w2.astype(jnp.bfloat16)
    b2c = b2.reshape(n_h2, 1)
    w3c = w3.reshape(n_h2, 1)                       # fc3 weight as a column
    b3c = b3.reshape(1, 1)

    # Lane-dense bf16 input slab: (features+ones+pad, padded batch).  Under jit this is
    # a single fused pad/transpose/cast; allow_input_fusion requests XLA fuse it into
    # the pallas_call input where supported.  Padded batch rows produce junk that is
    # sliced off below.
    xf = jnp.concatenate(
        [x, jnp.ones((B, 1), x.dtype), jnp.zeros((B, n_f - n_in - 1), x.dtype)], axis=1)
    xt = jnp.pad(xf, ((0, b_pad - B), (0, 0))).T.astype(jnp.bfloat16)   # (n_f, b_pad)

    flops = 2 * b_pad * (n_f * n_h1 + n_h1 * n_h2 + n_h2)
    bytes_accessed = (xt.size * 2 + b_pad * 4
                      + (w1p.size + w2b.size) * 2 + (2 * n_h2 + 1) * 4)

    out = pl.pallas_call(
        functools.partial(mlp_kernel, chunk=c),
        out_shape=jax.ShapeDtypeStruct((1, b_pad), jnp.float32),
        grid=grid,
        in_specs=[
            pl.BlockSpec((n_f, tb), lambda i: (0, i)),      # x tile (streamed)
            pl.BlockSpec((n_h1, n_f), lambda i: (0, 0)),    # W1 (+b1), VMEM-resident
            pl.BlockSpec((n_h2, n_h1), lambda i: (0, 0)),   # W2
            pl.BlockSpec((n_h2, 1), lambda i: (0, 0)),      # b2
            pl.BlockSpec((n_h2, 1), lambda i: (0, 0)),      # W3 column
            pl.BlockSpec((1, 1), lambda i: (0, 0)),         # b3
        ],
        out_specs=pl.BlockSpec((1, tb), lambda i: (0, i)),
        compiler_params=pltpu.CompilerParams(
            dimension_semantics=("parallel",),
            allow_input_fusion=[True, False, False, False, False, False],
            vmem_limit_bytes=64 * 1024 * 1024,
        ),
        cost_estimate=pl.CostEstimate(
            flops=flops, transcendentals=0, bytes_accessed=bytes_accessed),
    )(xt, w1p, w2b, b2c, w3c, b3c)
    return out[0, :B].reshape(B, 1)


def init_params(key):
    """Deterministic init matching the PyTorch layer shapes (PyTorch (out, in) layout):
       fc1: Linear(13, 64), fc2: Linear(64, 32), fc3: Linear(32, 1)."""
    ks = jax.random.split(key, 6)

    def uniform_fan_in(k, shape, fan_in):
        bound = 1.0 / jnp.sqrt(fan_in)
        return jax.random.uniform(k, shape, jnp.float32, -bound, bound)

    w1 = uniform_fan_in(ks[0], (64, 13), 13.0)
    b1 = uniform_fan_in(ks[1], (64,), 13.0)
    w2 = uniform_fan_in(ks[2], (32, 64), 64.0)
    b2 = uniform_fan_in(ks[3], (32,), 64.0)
    w3 = uniform_fan_in(ks[4], (1, 32), 32.0)
    b3 = uniform_fan_in(ks[5], (1,), 32.0)
    return (w1, b1, w2, b2, w3, b3)


def reference_forward(x, params):
    """Pure-JAX reference mirroring the kernel's dtype strategy
    (bf16 fc1/fc2 operands incl. the folded b1, f32 accumulation, f32 fc3)."""
    w1, b1, w2, b2, w3, b3 = params
    bf = jnp.bfloat16
    xb = x.astype(bf)
    h1 = (jnp.dot(xb, w1.astype(bf).T, preferred_element_type=jnp.float32)
          + b1.astype(bf).astype(jnp.float32))
    h1 = jnp.maximum(h1, 0.0)
    h2 = jnp.dot(h1.astype(bf), w2.astype(bf).T,
                 preferred_element_type=jnp.float32) + b2
    h2 = jnp.maximum(h2, 0.0)
    return jnp.dot(h2, w3.T) + b3


if __name__ == "__main__":
    key = jax.random.PRNGKey(0)
    kx1, kx2, kp = jax.random.split(key, 3)
    params = init_params(kp)

    # Small primary test (single grid step, single 128-lane tile).
    B = 8
    x = jax.random.normal(kx1, (B, 13), dtype=jnp.float32)
    out = jax.block_until_ready(tab_transformer_forward(x, params))
    ref = reference_forward(x, params)
    assert out.shape == (B, 1), out.shape
    assert jnp.allclose(out, ref, atol=5e-3, rtol=5e-3), "mismatch vs reference (B=8)"

    # Multi-step grid + boundary-block (b_pad % tb != 0) + chunk-loop path.
    B2 = 1030
    x2 = jax.random.normal(kx2, (B2, 13), dtype=jnp.float32)
    out2 = jax.block_until_ready(tab_transformer_forward(x2, params, tile_b=512))
    ref2 = reference_forward(x2, params)
    assert out2.shape == (B2, 1), out2.shape
    assert jnp.allclose(out2, ref2, atol=5e-3, rtol=5e-3), "mismatch vs reference (B=1030)"

    print("KERNEL_OK")
</pallas_src>

<mosaic_0001>
module attributes {stable_mosaic.version = 11 : i64} {
  func.func @mlp_kernel(%arg0: i32, %arg1: memref<16x128xbf16, #tpu.memory_space<vmem>>, %arg2: memref<64x16xbf16, #tpu.memory_space<vmem>>, %arg3: memref<32x64xbf16, #tpu.memory_space<vmem>>, %arg4: memref<32x1xf32, #tpu.memory_space<vmem>>, %arg5: memref<32x1xf32, #tpu.memory_space<vmem>>, %arg6: memref<1x1xf32, #tpu.memory_space<vmem>>, %arg7: memref<1x128xf32, #tpu.memory_space<vmem>>) attributes {dimension_semantics = [#tpu.dimension_semantics<parallel>], iteration_bounds = array<i64: 1>, scalar_prefetch = 0 : i64, scratch_operands = 0 : i64, tpu.core_type = #tpu.core_type<tc>, window_params = [{transform_indices = @transform_0, window_bounds = array<i64: 16, 128>}, {pipeline_mode = #tpu.pipeline_mode<synchronous>, transform_indices = @transform_1, window_bounds = array<i64: 64, 16>}, {pipeline_mode = #tpu.pipeline_mode<synchronous>, transform_indices = @transform_2, window_bounds = array<i64: 32, 64>}, {pipeline_mode = #tpu.pipeline_mode<synchronous>, transform_indices = @transform_3, window_bounds = array<i64: 32, 1>}, {pipeline_mode = #tpu.pipeline_mode<synchronous>, transform_indices = @transform_4, window_bounds = array<i64: 32, 1>}, {pipeline_mode = #tpu.pipeline_mode<synchronous>, transform_indices = @transform_5, window_bounds = array<i64: 1, 1>}, {transform_indices = @transform_6, window_bounds = array<i64: 1, 128>}]} {
    %c0 = arith.constant 0 : index
    %c0_0 = arith.constant 0 : index
    %0 = vector.load %arg2[%c0, %c0_0] : memref<64x16xbf16, #tpu.memory_space<vmem>>, vector<64x16xbf16>
    %c0_1 = arith.constant 0 : index
    %c0_2 = arith.constant 0 : index
    %1 = vector.load %arg3[%c0_1, %c0_2] : memref<32x64xbf16, #tpu.memory_space<vmem>>, vector<32x64xbf16>
    %c0_3 = arith.constant 0 : index
    %c0_4 = arith.constant 0 : index
    %2 = vector.load %arg4[%c0_3, %c0_4] : memref<32x1xf32, #tpu.memory_space<vmem>>, vector<32x1xf32>
    %3 = vector.shape_cast %2 : vector<32x1xf32> to vector<32x1xf32>
    %4 = vector.broadcast %3 : vector<32x1xf32> to vector<32x128xf32>
    %c0_5 = arith.constant 0 : index
    %c0_6 = arith.constant 0 : index
    %5 = vector.load %arg5[%c0_5, %c0_6] : memref<32x1xf32, #tpu.memory_space<vmem>>, vector<32x1xf32>
    %6 = vector.shape_cast %5 : vector<32x1xf32> to vector<32x1xf32>
    %7 = vector.broadcast %6 : vector<32x1xf32> to vector<32x128xf32>
    %c0_7 = arith.constant 0 : index
    %c0_8 = arith.constant 0 : index
    %8 = vector.load %arg6[%c0_7, %c0_8] : memref<1x1xf32, #tpu.memory_space<vmem>>, vector<1x1xf32>
    %9 = vector.shape_cast %8 : vector<1x1xf32> to vector<1x1xf32>
    %10 = vector.broadcast %9 : vector<1x1xf32> to vector<1x128xf32>
    %c0_i32 = arith.constant 0 : i32
    %c128_i32 = arith.constant 128 : i32
    %11 = arith.muli %c0_i32, %c128_i32 : i32
    %12 = tpu.assume_multiple %11, 128 : i32
    %c0_9 = arith.constant 0 : index
    %13 = arith.index_cast %12 : i32 to index
    %14 = vector.load %arg1[%c0_9, %13] : memref<16x128xbf16, #tpu.memory_space<vmem>>, vector<16x128xbf16>
    %cst = arith.constant dense<0.000000e+00> : vector<64x128xf32>
    %15 = tpu.matmul %0, %14, %cst {dimension_numbers = #tpu.dot_dimension_numbers<[1], [0], [0], [1], [0, 0, 1, 1], [], []>} : vector<64x16xbf16>, vector<16x128xbf16>, vector<64x128xf32> -> vector<64x128xf32>
    %cst_10 = arith.constant 0.000000e+00 : f32
    %16 = vector.broadcast %cst_10 : f32 to vector<64x128xf32>
    %17 = arith.maximumf %15, %16 : vector<64x128xf32>
    %18 = arith.truncf %17 : vector<64x128xf32> to vector<64x128xbf16>
    %cst_11 = arith.constant dense<0.000000e+00> : vector<32x128xf32>
    %19 = tpu.matmul %1, %18, %cst_11 {dimension_numbers = #tpu.dot_dimension_numbers<[1], [0], [0], [1], [0, 0, 1, 1], [], []>} : vector<32x64xbf16>, vector<64x128xbf16>, vector<32x128xf32> -> vector<32x128xf32>
    %20 = arith.addf %19, %4 : vector<32x128xf32>
    %cst_12 = arith.constant 0.000000e+00 : f32
    %21 = vector.broadcast %cst_12 : f32 to vector<32x128xf32>
    %22 = arith.maximumf %20, %21 : vector<32x128xf32>
    %23 = arith.mulf %22, %7 : vector<32x128xf32>
    %cst_13 = arith.constant dense<0.000000e+00> : vector<128xf32>
    %24 = vector.multi_reduction <add>, %23, %cst_13 [0] : vector<32x128xf32> to vector<128xf32>
    %25 = vector.shape_cast %24 : vector<128xf32> to vector<1x128xf32>
    %26 = arith.addf %25, %10 : vector<1x128xf32>
    %c0_14 = arith.constant 0 : index
    %27 = arith.index_cast %12 : i32 to index
    %28 = vector.load %arg7[%c0_14, %27] : memref<1x128xf32, #tpu.memory_space<vmem>>, vector<1x128xf32>
    tpu.vector_store %arg7[%c0_14, %27], %26 {strides = array<i32>} : memref<1x128xf32, #tpu.memory_space<vmem>>, vector<1x128xf32>,
    %c1_i32 = arith.constant 1 : i32
    return
  }
  func.func @transform_0(%arg0: i32) -> (i32, i32) {
    %c0_i32 = arith.constant 0 : i32
    %c0_i32_0 = arith.constant 0 : i32
    return %c0_i32, %arg0 : i32, i32
  }
  func.func @transform_1(%arg0: i32) -> (i32, i32) {
    %c0_i32 = arith.constant 0 : i32
    %c0_i32_0 = arith.constant 0 : i32
    %c0_i32_1 = arith.constant 0 : i32
    return %c0_i32, %c0_i32_0 : i32, i32
  }
  func.func @transform_2(%arg0: i32) -> (i32, i32) {
    %c0_i32 = arith.constant 0 : i32
    %c0_i32_0 = arith.constant 0 : i32
    %c0_i32_1 = arith.constant 0 : i32
    return %c0_i32, %c0_i32_0 : i32, i32
  }
  func.func @transform_3(%arg0: i32) -> (i32, i32) {
    %c0_i32 = arith.constant 0 : i32
    %c0_i32_0 = arith.constant 0 : i32
    %c0_i32_1 = arith.constant 0 : i32
    return %c0_i32, %c0_i32_0 : i32, i32
  }
  func.func @transform_4(%arg0: i32) -> (i32, i32) {
    %c0_i32 = arith.constant 0 : i32
    %c0_i32_0 = arith.constant 0 : i32
    %c0_i32_1 = arith.constant 0 : i32
    return %c0_i32, %c0_i32_0 : i32, i32
  }
  func.func @transform_5(%arg0: i32) -> (i32, i32) {
    %c0_i32 = arith.constant 0 : i32
    %c0_i32_0 = arith.constant 0 : i32
    %c0_i32_1 = arith.constant 0 : i32
    return %c0_i32, %c0_i32_0 : i32, i32
  }
  func.func @transform_6(%arg0: i32) -> (i32, i32) {
    %c0_i32 = arith.constant 0 : i32
    %c0_i32_0 = arith.constant 0 : i32
    return %c0_i32, %arg0 : i32, i32
  }
}

</mosaic_0001>

<bundles_post_ra>
// kernel: tab_transformer_forward.2
= control target key start
LH: loop header
LB: loop body
LE: loop exit
PB: predicated region body
PF: predicated region fallthrough
CT: control target
= control target key end

     0   :  { %s513_s0 = inlined_call_operand.vmem [shape: bf16[64,16], index: 0, kind: input, shape index: {}]   ;;  %s514_s1 = inlined_call_operand.vmem [shape: bf16[32,64], index: 1, kind: input, shape index: {}]   ;;  %s515_s2 = inlined_call_operand.vmem [shape: f32[32,1], index: 2, kind: input, shape index: {}]   ;;  %s516_s3 = inlined_call_operand.vmem [shape: f32[32,1], index: 3, kind: input, shape index: {}]   ;;  %s517_s4 = inlined_call_operand.<no memory space> [shape: f32[1,1], index: 4, kind: input, shape index: {}]   ;;  %s518_s5 = inlined_call_operand.vmem [shape: bf16[8,16], index: 5, kind: input, shape index: {}]   ;;  %s519_s6 = inlined_call_operand.<no memory space> [shape: bf16[], index: 6, kind: input, shape index: {}]   ;;  %s520_s7 = inlined_call_operand.vmem [shape: f32[1,128], index: 7, kind: output, shape index: {}]  }
   0x1   :  { %v12_v0 = vstv %s519_s6  ;;  %v17_v1 = vstv %s517_s4 }
   0x2   :  { %v13_v2 = vunpack.i.l.bf16 %v12_v0  ;;  %18 = vst [vmem:[#allocation7] sm:$0x1] %v17_v1 }
   0x3   :  { %v40_v3 = vld [vmem:[%s518_s5] sm:$0xff]   ;;  %v43_v4 = vlaneseq  ;;  %vm172_vm0 = vcmask 130048   ;;  %v409_v11 = vmov 0.0   ;;  %v404_v15 = vld [vmem:[%s513_s0 + $0x8] sm:$0xff]   ;;  %v405_v16 = vld [vmem:[%s513_s0 + $0x10] sm:$0xff]   ;;  %vm272_vm2 = vcmask 523264  }
   0x4   :  { %v41_v5 = vunpack.c.l.bf16 %v40_v3  ;;  %v62_v6 = vunpack.c.h.bf16 %v40_v3  ;;  %v403_v7 = vld [vmem:[%s513_s0] sm:$0xff]   ;;  %v406_v17 = vld [vmem:[%s513_s0 + $0x18] sm:$0xff]   ;;  %v88_v20 = vld [vmem:[%s515_s2 + $0x10] sm:$0xff]  ;;  %v410_v21 = vmov 0  }
   0x5   :  { %v44_v8 = vand.u32 127, %v43_v4  ;;  %378 = vmatprep.mubr.msk.bf16.mxu0 %vm172_vm0, %v403_v7  ;;  %v407_v18 = vld [vmem:[%s514_s1] sm:$0xff]   ;;  %400 = vset.pattern.permute.xlu0 %v410_v21  ;;  %v87_v22 = vld [vmem:[%s515_s2 + $0x8] sm:$0xff]  ;;  %v89_v23 = vld [vmem:[%s515_s2 + $0x18] sm:$0xff] }
   0x6   :  { %394 = vmatprep.mubr.msk.bf16.mxu1 %vm272_vm2, %v407_v18  ;;  %v86_v19 = vld [vmem:[%s515_s2] sm:$0xff]  ;;  %401 = vset.pattern.permute.xlu1 %v410_v21  ;;  %v111_v25 = vld [vmem:[%s516_s3 + $0x8] sm:$0xff]  ;;  %v112_v26 = vld [vmem:[%s516_s3 + $0x10] sm:$0xff] }
   0x7   :  { %vm46_vm1 = vcmp.lt.s32.totalorder %v44_v8, 8  ;;  %92 = vperm.xlu0 %400, %v86_v19   ;;  %102 = vperm.xlu1 %401, %v88_v20   ;;  %v110_v24 = vld [vmem:[%s516_s3] sm:$0xff]  ;;  %v113_v27 = vld [vmem:[%s516_s3 + $0x18] sm:$0xff]  ;;  %v408_v49 = vld [vmem:[%s514_s1 + $0x8] sm:$0xff]  }
   0x8   :  { %v47_v9 = vsel %vm46_vm1, %v41_v5, %v13_v2  ;;  %v68_v10 = vsel %vm46_vm1, %v62_v6, %v13_v2 }
   0x9   :  { %v48_v12 = vpack.c.bf16 %v409_v11, %v47_v9  ;;  %v70_v13 = vpack.c.bf16 %v409_v11, %v68_v10  ;;  %v134_v28 = vld [vmem:[#allocation7] sm:$0x1] }
   0xb   :  { %50 = vst [vmem:[#allocation8] sm:$0xf] %v48_v12  ;;  %72 = vst [vmem:[#allocation8 + $0x4] sm:$0xf] %v70_v13  ;;  %97 = vperm.xlu0 %400, %v87_v22   ;;  %107 = vperm.xlu1 %401, %v89_v23  }
   0xf   :  { %116 = vperm.xlu0 %400, %v110_v24   ;;  %121 = vperm.xlu1 %401, %v111_v25  }
  0x12   :  { %v402_v14 = vld [vmem:[#allocation8] sm:$0xff]  }
  0x13   :  { %376 = vmatprep.subr.bf16.mxu0 %v402_v14  ;;  %126 = vperm.xlu0 %400, %v112_v26  }
  0x14   :  { %377 = vmatpush3.bf16.msra.mxu0 %v402_v14  ;;  %131 = vperm.xlu1 %401, %v113_v27  }
  0x17   :  { %379 = vmatmul.mubr.msk.bf16.vlgmr.msra.gmra.mrb[0].mxu0 %vm172_vm0, %v404_v15  ;;  %137 = vperm.xlu0 %400, %v134_v28   ;;  %v141_v15 = vshrl.u32 %v43_v4, 7 }
  0x18   :  { %382 = vmatprep.mubr.msk.bf16.mxu0 %vm172_vm0, %v405_v16 }
  0x19   :  { %v142_v18 = vsub.s32 0, %v141_v15 }
  0x1f   :  { %383 = vmatmul.mubr.msk.bf16.gmra.mrb[4].mxu0 %vm172_vm0, %v406_v17 }
  0x86   :  { %v93_v50 = vpop.permute.xlu0 %92  ;;  %v103_v51 = vpop.permute.xlu1 %102 }
  0x8a   :  { %v98_v52 = vpop.permute.xlu0 %97  ;;  %v108_v53 = vpop.permute.xlu1 %107 }
  0x8e   :  { %v117_v59 = vpop.permute.xlu0 %116  ;;  %v122_v0 = vpop.permute.xlu1 %121 }
  0x92   :  { %v127_v7 = vpop.permute.xlu0 %126 }
  0x93   :  { %v132_v10 = vpop.permute.xlu1 %131 }
  0x96   :  { %v138_v20 = vpop.permute.xlu0 %137 }
  0x97   :  { %v143_v22 = vrot.slane %v138_v20, %v142_v18 }
  0xea   :  { %v380_v29 = vpop.f32.mrb[0].mxu0 }
  0xeb   :  { %v219_v30 = vpop.f32.mrb[1].mxu0  ;;  %v252_v32 = vmax.f32 %v380_v29, 0.0 }
  0xec   :  { %v381_v31 = vpop.f32.mrb[2].mxu0  ;;  %v250_v35 = vmax.f32 %v219_v30, 0.0 }
  0xed   :  { %v253_v33 = vmax.f32 %v381_v31, 0.0  ;;  %v222_v34 = vpop.f32.mrb[3].mxu0 }
  0xee   :  { %v251_v36 = vmax.f32 %v222_v34, 0.0 }
  0xef   :  { %v259_v37 = vpack.c.bf16 %v253_v33, %v252_v32 }
  0xf0   :  { %v258_v38 = vpack.c.bf16 %v251_v36, %v250_v35 }
  0xf2   :  { %v384_v39 = vpop.f32.mrb[4].mxu0  ;;  %386 = vmatprep.subr.bf16.mxu1 %v258_v38 }
  0xf3   :  { %v235_v40 = vpop.f32.mrb[5].mxu0  ;;  %387 = vmatpush3.bf16.msra.mxu1 %v258_v38  ;;  %v256_v42 = vmax.f32 %v384_v39, 0.0 }
  0xf4   :  { %v385_v41 = vpop.f32.mrb[6].mxu0  ;;  %388 = vmatprep.subr.bf16.mxu1 %v259_v37  ;;  %v254_v45 = vmax.f32 %v235_v40, 0.0 }
  0xf5   :  { %v257_v43 = vmax.f32 %v385_v41, 0.0  ;;  %v238_v44 = vpop.f32.mrb[7].mxu0 }
  0xf6   :  { %v255_v46 = vmax.f32 %v238_v44, 0.0 }
  0xf7   :  { %v261_v47 = vpack.c.bf16 %v257_v43, %v256_v42  ;;  %389 = vmatpush3.bf16.msra.mxu1 %v259_v37 }
  0xf8   :  { %v260_v48 = vpack.c.bf16 %v255_v46, %v254_v45 }
  0xfa   :  { %390 = vmatprep.subr.bf16.mxu1 %v260_v48 }
  0xfb   :  { %391 = vmatpush3.bf16.msra.mxu1 %v260_v48 }
  0xfc   :  { %392 = vmatprep.subr.bf16.mxu1 %v261_v47 }
  0xff   :  { %393 = vmatpush3.bf16.msra.mxu1 %v261_v47 }
 0x102   :  { %395 = vmatmul.mubr.msk.bf16.vlgmr.msra.gmra.mrb[0].mxu1 %vm272_vm2, %v408_v49 }
 0x1d5   :  { %v396_v54 = vpop.f32.mrb[0].mxu1 }
 0x1d6   :  { %v313_v55 = vpop.f32.mrb[1].mxu1  ;;  %v322_v56 = vadd.f32 %v396_v54, %v103_v51 }
 0x1d7   :  { %v314_v57 = vadd.f32 %v313_v55, %v93_v50  ;;  %v397_v58 = vpop.f32.mrb[2].mxu1 }
 0x1d8   :  { %v316_v60 = vpop.f32.mrb[3].mxu1  ;;  %v325_v62 = vadd.f32 %v397_v58, %v108_v53  ;;  %v330_v1 = vmax.f32 %v322_v56, 0.0 }
 0x1d9   :  { %v328_v61 = vmax.f32 %v314_v57, 0.0  ;;  %v317_v63 = vadd.f32 %v316_v60, %v98_v52 }
 0x1da   :  { %v331_v5 = vmax.f32 %v325_v62, 0.0  ;;  %v334_v8 = vmul.f32 %v330_v1, %v127_v7 }
 0x1db   :  { %v329_v2 = vmax.f32 %v317_v63, 0.0  ;;  %v332_v3 = vmul.f32 %v328_v61, %v117_v59 }
 0x1dc   :  { %v335_v11 = vmul.f32 %v331_v5, %v132_v10 }
 0x1dd   :  { %v333_v6 = vmul.f32 %v329_v2, %v122_v0 }
 0x1df   :  { %v336_v9 = vadd.f32 %v333_v6, %v332_v3 }
 0x1e1   :  { %v337_v12 = vadd.f32 %v336_v9, %v334_v8 }
 0x1e3   :  { %v338_v13 = vadd.f32 %v337_v12, %v335_v11 }
 0x1e5   :  { %v339_v14 = vrot.slane %v338_v13, 4 }
 0x1e7   :  { %v340_v16 = vadd.f32 %v339_v14, %v338_v13 }
 0x1e9   :  { %v341_v17 = vrot.slane %v340_v16, 2 }
 0x1eb   :  { %v342_v19 = vadd.f32 %v341_v17, %v340_v16 }
 0x1ed   :  { %v343_v21 = vrot.slane %v342_v19, 1 }
 0x1ef   :  { %v344_v23 = vadd.f32 %v343_v21, %v342_v19 }
 0x1f1   :  { %v345_v24 = vadd.f32 %v344_v23, %v143_v22 }
 0x1f3   :  { %346 = vst [vmem:[%s520_s7] sm:$0x1] %v345_v24 }

</bundles_post_ra>
